<compile_context>
chip_gen: v7x
topology: tpu7x:2x2x1
jax: 0.10.0
libtpu: 0.0.40
codegen_flags: <defaults>
</compile_context>

<pallas_src>
import jax
import jax.numpy as jnp
from jax.experimental import pallas as pl
from jax.experimental.pallas import tpu as pltpu


# ------------------------------ kernel -------------------------------------

def _make_concat_conv_bn_relu_kernel(C1, C2, H, W, Cout):
    """Per-batch-image fused kernel: concat([x2,x1]) -> conv3x3(pad=1) -> +bias -> ReLU."""
    Cin = C1 + C2
    Hp = H + 2  # rows padded by 1 on each side; W padding lives in the band matrix

    def kernel(x1_ref, x2_ref, band_ref, bias_ref, o_ref, xrow_ref):
        # xrow_ref: VMEM scratch (Hp, Cin*W); row r = padded image row r-1,
        # lanes [ci*W, (ci+1)*W) hold channel ci of the concatenated input.
        xrow_ref[...] = jnp.zeros_like(xrow_ref)

        # Fused torch.cat([x2, x1], dim=1): channels 0..C2-1 come from x2,
        # channels C2..Cin-1 come from x1.  (static unrolled stores)
        for ci in range(C2):
            xrow_ref[1:1 + H, ci * W:(ci + 1) * W] = x2_ref[ci]
        for j in range(C1):
            ci = C2 + j
            xrow_ref[1:1 + H, ci * W:(ci + 1) * W] = x1_ref[j]

        # 3x3 conv as 3 banded matmuls (one per kernel row ky).
        #   acc[y, x*Cout+co] = sum_ky sum_{ci,x'} xrow[y+ky, ci*W+x'] *
        #                                band[ky, ci*W+x', x*Cout+co]
        acc = jnp.zeros((H, W * Cout), jnp.float32)
        for ky in range(3):
            acc = acc + jnp.dot(
                xrow_ref[ky:ky + H, :],           # (H, Cin*W)
                band_ref[ky],                     # (Cin*W, W*Cout)
                preferred_element_type=jnp.float32,
            )

        # Folded BatchNorm (eval mode): scale is already in the band weights,
        # only the per-channel bias (tiled over x) remains.  Then ReLU.
        y = acc + bias_ref[...]
        o_ref[...] = jnp.maximum(y, 0.0).astype(o_ref.dtype)

    return kernel


# ------------------------- weight / band preparation ------------------------

def _build_band(w_folded, W):
    """Banded weight matrices for the per-kernel-row matmuls.

    w_folded: (Cout, Cin, 3, 3) OIHW with the BN scale already folded in.
    Returns (3, Cin*W, W*Cout) where
      band[ky, ci*W + x', x*Cout + co] = w[co, ci, ky, x'-x+1]  if 0<=x'-x+1<3
                                         else 0   (implements W zero-padding).
    """
    Cout, Cin, KH, KW = w_folded.shape
    wt = jnp.transpose(w_folded, (2, 1, 3, 0))        # (ky, ci, kx, co)
    xp = jnp.arange(W)[:, None]                        # source column x'
    xo = jnp.arange(W)[None, :]                        # output column x
    kx = xp - xo + 1                                   # (W, W)
    valid = (kx >= 0) & (kx < KW)
    kx_c = jnp.clip(kx, 0, KW - 1)
    band = wt[:, :, kx_c, :]                           # (ky, ci, x', x, co)
    band = band * valid[None, None, :, :, None].astype(w_folded.dtype)
    return band.reshape(KH, Cin * W, W * Cout)


def _fold_bn_into_conv(w, conv_bias, gamma, beta, running_mean, running_var,
                       eps=1e-5):
    """Fold eval-mode BN into conv weights (exact, conv is linear)."""
    scale = gamma / jnp.sqrt(running_var + eps)             # (Cout,)
    w_folded = w * scale[:, None, None, None]               # (Cout,Cin,3,3)
    bias_folded = scale * (conv_bias - running_mean) + beta  # (Cout,)
    return w_folded, bias_folded


# ------------------------------ forward pass --------------------------------

def concat_forward(x1_nchw, x2_nchw, params):
    """Pallas implementation of Concat.forward(x1, x2). Inputs/outputs NCHW."""
    N, C1, H, W = x1_nchw.shape
    C2 = x2_nchw.shape[1]
    Cin = C1 + C2
    Cout = params["w"].shape[0]

    w_folded, bias_folded = _fold_bn_into_conv(
        params["w"], params["cb"], params["gamma"], params["beta"],
        params["rm"], params["rv"])
    band = _build_band(w_folded, W).astype(jnp.float32)        # (3, Cin*W, W*Cout)
    bias_row = jnp.tile(bias_folded, W).reshape(1, W * Cout)    # [x*Cout+co]->bias[co]
    bias_row = bias_row.astype(jnp.float32)

    kernel = _make_concat_conv_bn_relu_kernel(C1, C2, H, W, Cout)

    out2d = pl.pallas_call(
        kernel,
        out_shape=jax.ShapeDtypeStruct((N, H, W * Cout), jnp.float32),
        grid_spec=pltpu.PrefetchScalarGridSpec(
            num_scalar_prefetch=0,
            grid=(N,),
            in_specs=[
                pl.BlockSpec((None, C1, H, W), lambda n: (n, 0, 0, 0)),   # x1
                pl.BlockSpec((None, C2, H, W), lambda n: (n, 0, 0, 0)),   # x2
                pl.BlockSpec((3, Cin * W, W * Cout), lambda n: (0, 0, 0)),  # band
                pl.BlockSpec((1, W * Cout), lambda n: (0, 0)),              # bias
            ],
            out_specs=pl.BlockSpec((None, H, W * Cout), lambda n: (n, 0, 0)),
            scratch_shapes=[pltpu.VMEM((H + 2, Cin * W), jnp.float32)],
        ),
        compiler_params=pltpu.CompilerParams(
            dimension_semantics=("parallel",)),
    )(x1_nchw.astype(jnp.float32), x2_nchw.astype(jnp.float32), band, bias_row)

    # (N, H, W*Cout) -> (N, Cout, H, W) to match PyTorch NCHW output.
    # Kept outside the kernel: single tiny XLA op on the final 16 KiB result.
    return jnp.transpose(out2d.reshape(N, H, W, Cout), (0, 3, 1, 2))


# ------------------------- parameter construction ---------------------------

def init_concat_params(key, in_channels, out_channels):
    """Deterministic synthetic params mirroring the PyTorch module layout."""
    kw, kb, kg, kbeta, krm, krv = jax.random.split(key, 6)
    return dict(
        w=0.1 * jax.random.normal(kw, (out_channels, in_channels, 3, 3),
                                  jnp.float32),                       # OIHW
        cb=0.1 * jax.random.normal(kb, (out_channels,), jnp.float32),
        gamma=0.5 + jax.random.uniform(kg, (out_channels,), jnp.float32),
        beta=0.1 * jax.random.normal(kbeta, (out_channels,), jnp.float32),
        rm=0.1 * jax.random.normal(krm, (out_channels,), jnp.float32),
        rv=0.5 + jax.random.uniform(krv, (out_channels,), jnp.float32),
    )


# -------------------------------- reference ---------------------------------

def concat_reference(x1, x2, p, eps=1e-5):
    x = jnp.concatenate([x2, x1], axis=1)
    y = jax.lax.conv_general_dilated(
        x, p["w"], window_strides=(1, 1), padding=[(1, 1), (1, 1)],
        dimension_numbers=("NCHW", "OIHW", "NCHW"))
    y = y + p["cb"][None, :, None, None]
    y = (p["gamma"][None, :, None, None]
         * (y - p["rm"][None, :, None, None])
         / jnp.sqrt(p["rv"][None, :, None, None] + eps)
         + p["beta"][None, :, None, None])
    return jnp.maximum(y, 0.0)


# ----------------------------------- main ------------------------------------

if __name__ == "__main__":
    key = jax.random.PRNGKey(0)
    k1, k2, kp = jax.random.split(key, 3)

    N, C1, C2, Cout, H, W = 2, 2, 2, 8, 16, 16   # in_channels = C1 + C2 = 4
    x1 = jax.random.normal(k1, (N, C1, H, W), jnp.float32)
    x2 = jax.random.normal(k2, (N, C2, H, W), jnp.float32)
    params = init_concat_params(kp, C1 + C2, Cout)

    out = jax.block_until_ready(concat_forward(x1, x2, params))
    ref = jax.block_until_ready(concat_reference(x1, x2, params))

    assert out.shape == (N, Cout, H, W), out.shape
    assert jnp.allclose(out, ref, rtol=1e-4, atol=1e-4), (
        float(jnp.max(jnp.abs(out - ref))))

    print("KERNEL_OK")
</pallas_src>

<mosaic_0001>
module attributes {stable_mosaic.version = 11 : i64} {
  func.func @kernel(%arg0: i32, %arg1: memref<1x2x16x16xf32, #tpu.memory_space<vmem>>, %arg2: memref<1x2x16x16xf32, #tpu.memory_space<vmem>>, %arg3: memref<3x64x128xf32, #tpu.memory_space<vmem>>, %arg4: memref<1x128xf32, #tpu.memory_space<vmem>>, %arg5: memref<1x16x128xf32, #tpu.memory_space<vmem>>, %arg6: memref<18x64xf32, #tpu.memory_space<vmem>>) attributes {dimension_semantics = [#tpu.dimension_semantics<parallel>], iteration_bounds = array<i64: 2>, scalar_prefetch = 0 : i64, scratch_operands = 1 : i64, tpu.core_type = #tpu.core_type<tc>, window_params = [{transform_indices = @transform_0, window_bounds = array<i64: 1, 2, 16, 16>}, {transform_indices = @transform_1, window_bounds = array<i64: 1, 2, 16, 16>}, {pipeline_mode = #tpu.pipeline_mode<synchronous>, transform_indices = @transform_2, window_bounds = array<i64: 3, 64, 128>}, {pipeline_mode = #tpu.pipeline_mode<synchronous>, transform_indices = @transform_3, window_bounds = array<i64: 1, 128>}, {transform_indices = @transform_4, window_bounds = array<i64: 1, 16, 128>}]} {
    %cst = arith.constant 0.000000e+00 : f32
    %0 = vector.broadcast %cst : f32 to vector<18x64xf32>
    %c0 = arith.constant 0 : index
    %c0_0 = arith.constant 0 : index
    %1 = vector.load %arg6[%c0, %c0_0] : memref<18x64xf32, #tpu.memory_space<vmem>>, vector<18x64xf32>
    tpu.vector_store %arg6[%c0, %c0_0], %0 {strides = array<i32>} : memref<18x64xf32, #tpu.memory_space<vmem>>, vector<18x64xf32>,
    %c0_1 = arith.constant 0 : index
    %c0_2 = arith.constant 0 : index
    %c0_3 = arith.constant 0 : index
    %c0_4 = arith.constant 0 : index
    %2 = vector.load %arg2[%c0_1, %c0_2, %c0_3, %c0_4] : memref<1x2x16x16xf32, #tpu.memory_space<vmem>>, vector<1x1x16x16xf32>
    %3 = vector.shape_cast %2 : vector<1x1x16x16xf32> to vector<16x16xf32>
    %c1 = arith.constant 1 : index
    %c0_5 = arith.constant 0 : index
    %4 = vector.load %arg6[%c1, %c0_5] : memref<18x64xf32, #tpu.memory_space<vmem>>, vector<16x16xf32>
    tpu.vector_store %arg6[%c1, %c0_5], %3 {strides = array<i32>} : memref<18x64xf32, #tpu.memory_space<vmem>>, vector<16x16xf32>,
    %c0_6 = arith.constant 0 : index
    %c1_7 = arith.constant 1 : index
    %c0_8 = arith.constant 0 : index
    %c0_9 = arith.constant 0 : index
    %5 = vector.load %arg2[%c0_6, %c1_7, %c0_8, %c0_9] : memref<1x2x16x16xf32, #tpu.memory_space<vmem>>, vector<1x1x16x16xf32>
    %6 = vector.shape_cast %5 : vector<1x1x16x16xf32> to vector<16x16xf32>
    %c1_10 = arith.constant 1 : index
    %c16 = arith.constant 16 : index
    %7 = vector.load %arg6[%c1_10, %c16] : memref<18x64xf32, #tpu.memory_space<vmem>>, vector<16x16xf32>
    tpu.vector_store %arg6[%c1_10, %c16], %6 {strides = array<i32>} : memref<18x64xf32, #tpu.memory_space<vmem>>, vector<16x16xf32>,
    %c0_11 = arith.constant 0 : index
    %c0_12 = arith.constant 0 : index
    %c0_13 = arith.constant 0 : index
    %c0_14 = arith.constant 0 : index
    %8 = vector.load %arg1[%c0_11, %c0_12, %c0_13, %c0_14] : memref<1x2x16x16xf32, #tpu.memory_space<vmem>>, vector<1x1x16x16xf32>
    %9 = vector.shape_cast %8 : vector<1x1x16x16xf32> to vector<16x16xf32>
    %c1_15 = arith.constant 1 : index
    %c32 = arith.constant 32 : index
    %10 = vector.load %arg6[%c1_15, %c32] : memref<18x64xf32, #tpu.memory_space<vmem>>, vector<16x16xf32>
    tpu.vector_store %arg6[%c1_15, %c32], %9 {strides = array<i32>} : memref<18x64xf32, #tpu.memory_space<vmem>>, vector<16x16xf32>,
    %c0_16 = arith.constant 0 : index
    %c1_17 = arith.constant 1 : index
    %c0_18 = arith.constant 0 : index
    %c0_19 = arith.constant 0 : index
    %11 = vector.load %arg1[%c0_16, %c1_17, %c0_18, %c0_19] : memref<1x2x16x16xf32, #tpu.memory_space<vmem>>, vector<1x1x16x16xf32>
    %12 = vector.shape_cast %11 : vector<1x1x16x16xf32> to vector<16x16xf32>
    %c1_20 = arith.constant 1 : index
    %c48 = arith.constant 48 : index
    %13 = vector.load %arg6[%c1_20, %c48] : memref<18x64xf32, #tpu.memory_space<vmem>>, vector<16x16xf32>
    tpu.vector_store %arg6[%c1_20, %c48], %12 {strides = array<i32>} : memref<18x64xf32, #tpu.memory_space<vmem>>, vector<16x16xf32>,
    %cst_21 = arith.constant 0.000000e+00 : f32
    %14 = vector.broadcast %cst_21 : f32 to vector<16x128xf32>
    %c0_22 = arith.constant 0 : index
    %c0_23 = arith.constant 0 : index
    %15 = vector.load %arg6[%c0_22, %c0_23] : memref<18x64xf32, #tpu.memory_space<vmem>>, vector<16x64xf32>
    %c0_24 = arith.constant 0 : index
    %c0_25 = arith.constant 0 : index
    %c0_26 = arith.constant 0 : index
    %16 = vector.load %arg3[%c0_24, %c0_25, %c0_26] : memref<3x64x128xf32, #tpu.memory_space<vmem>>, vector<1x64x128xf32>
    %17 = vector.shape_cast %16 : vector<1x64x128xf32> to vector<64x128xf32>
    %cst_27 = arith.constant dense<0.000000e+00> : vector<16x128xf32>
    %18 = tpu.matmul %15, %17, %cst_27 {dimension_numbers = #tpu.dot_dimension_numbers<[1], [0], [0], [1], [0, 0, 1, 1], [], []>} : vector<16x64xf32>, vector<64x128xf32>, vector<16x128xf32> -> vector<16x128xf32>
    %19 = arith.addf %14, %18 : vector<16x128xf32>
    %c1_28 = arith.constant 1 : index
    %c0_29 = arith.constant 0 : index
    %20 = vector.load %arg6[%c1_28, %c0_29] : memref<18x64xf32, #tpu.memory_space<vmem>>, vector<16x64xf32>
    %c1_30 = arith.constant 1 : index
    %c0_31 = arith.constant 0 : index
    %c0_32 = arith.constant 0 : index
    %21 = vector.load %arg3[%c1_30, %c0_31, %c0_32] : memref<3x64x128xf32, #tpu.memory_space<vmem>>, vector<1x64x128xf32>
    %22 = vector.shape_cast %21 : vector<1x64x128xf32> to vector<64x128xf32>
    %cst_33 = arith.constant dense<0.000000e+00> : vector<16x128xf32>
    %23 = tpu.matmul %20, %22, %cst_33 {dimension_numbers = #tpu.dot_dimension_numbers<[1], [0], [0], [1], [0, 0, 1, 1], [], []>} : vector<16x64xf32>, vector<64x128xf32>, vector<16x128xf32> -> vector<16x128xf32>
    %24 = arith.addf %19, %23 : vector<16x128xf32>
    %c2 = arith.constant 2 : index
    %c0_34 = arith.constant 0 : index
    %25 = vector.load %arg6[%c2, %c0_34] : memref<18x64xf32, #tpu.memory_space<vmem>>, vector<16x64xf32>
    %c2_35 = arith.constant 2 : index
    %c0_36 = arith.constant 0 : index
    %c0_37 = arith.constant 0 : index
    %26 = vector.load %arg3[%c2_35, %c0_36, %c0_37] : memref<3x64x128xf32, #tpu.memory_space<vmem>>, vector<1x64x128xf32>
    %27 = vector.shape_cast %26 : vector<1x64x128xf32> to vector<64x128xf32>
    %cst_38 = arith.constant dense<0.000000e+00> : vector<16x128xf32>
    %28 = tpu.matmul %25, %27, %cst_38 {dimension_numbers = #tpu.dot_dimension_numbers<[1], [0], [0], [1], [0, 0, 1, 1], [], []>} : vector<16x64xf32>, vector<64x128xf32>, vector<16x128xf32> -> vector<16x128xf32>
    %29 = arith.addf %24, %28 : vector<16x128xf32>
    %c0_39 = arith.constant 0 : index
    %c0_40 = arith.constant 0 : index
    %30 = vector.load %arg4[%c0_39, %c0_40] : memref<1x128xf32, #tpu.memory_space<vmem>>, vector<1x128xf32>
    %31 = vector.broadcast %30 : vector<1x128xf32> to vector<16x128xf32>
    %32 = arith.addf %29, %31 : vector<16x128xf32>
    %cst_41 = arith.constant 0.000000e+00 : f32
    %33 = vector.broadcast %cst_41 : f32 to vector<16x128xf32>
    %34 = arith.maximumf %32, %33 : vector<16x128xf32>
    %c0_42 = arith.constant 0 : index
    %c0_43 = arith.constant 0 : index
    %c0_44 = arith.constant 0 : index
    %35 = vector.load %arg5[%c0_42, %c0_43, %c0_44] : memref<1x16x128xf32, #tpu.memory_space<vmem>>, vector<1x16x128xf32>
    %36 = vector.shape_cast %35 : vector<1x16x128xf32> to vector<16x128xf32>
    %37 = vector.shape_cast %34 : vector<16x128xf32> to vector<1x16x128xf32>
    tpu.vector_store %arg5[%c0_42, %c0_43, %c0_44], %37 {strides = array<i32>} : memref<1x16x128xf32, #tpu.memory_space<vmem>>, vector<1x16x128xf32>,
    return
  }
  func.func @transform_0(%arg0: i32) -> (i32, i32, i32, i32) {
    %c0_i32 = arith.constant 0 : i32
    %c0_i32_0 = arith.constant 0 : i32
    %c0_i32_1 = arith.constant 0 : i32
    %c0_i32_2 = arith.constant 0 : i32
    return %arg0, %c0_i32, %c0_i32_0, %c0_i32_1 : i32, i32, i32, i32
  }
  func.func @transform_1(%arg0: i32) -> (i32, i32, i32, i32) {
    %c0_i32 = arith.constant 0 : i32
    %c0_i32_0 = arith.constant 0 : i32
    %c0_i32_1 = arith.constant 0 : i32
    %c0_i32_2 = arith.constant 0 : i32
    return %arg0, %c0_i32, %c0_i32_0, %c0_i32_1 : i32, i32, i32, i32
  }
  func.func @transform_2(%arg0: i32) -> (i32, i32, i32) {
    %c0_i32 = arith.constant 0 : i32
    %c0_i32_0 = arith.constant 0 : i32
    %c0_i32_1 = arith.constant 0 : i32
    %c0_i32_2 = arith.constant 0 : i32
    return %c0_i32, %c0_i32_0, %c0_i32_1 : i32, i32, i32
  }
  func.func @transform_3(%arg0: i32) -> (i32, i32) {
    %c0_i32 = arith.constant 0 : i32
    %c0_i32_0 = arith.constant 0 : i32
    %c0_i32_1 = arith.constant 0 : i32
    return %c0_i32, %c0_i32_0 : i32, i32
  }
  func.func @transform_4(%arg0: i32) -> (i32, i32, i32) {
    %c0_i32 = arith.constant 0 : i32
    %c0_i32_0 = arith.constant 0 : i32
    %c0_i32_1 = arith.constant 0 : i32
    return %arg0, %c0_i32, %c0_i32_0 : i32, i32, i32
  }
}

</mosaic_0001>

<bundles_post_ra>
// kernel: tpu_custom_call.1
= control target key start
LH: loop header
LB: loop body
LE: loop exit
PB: predicated region body
PF: predicated region fallthrough
CT: control target
= control target key end

     0   :  { %s1447_s0 = inlined_call_operand.hbm [shape: f32[2,2,16,16], index: 0, kind: input, shape index: {}]   ;;  %s1448_s1 = inlined_call_operand.hbm [shape: f32[2,2,16,16], index: 1, kind: input, shape index: {}]   ;;  %s1449_s2 = inlined_call_operand.hbm [shape: f32[3,64,128], index: 2, kind: input, shape index: {}]   ;;  %s1450_s3 = inlined_call_operand.vmem [shape: f32[1,128], index: 3, kind: input, shape index: {}]   ;;  %s1451_s4 = inlined_call_operand.hbm [shape: f32[2,16,128], index: 4, kind: output, shape index: {}]  }
   0x1   :  { %1459 = sst [smem:[#allocation15_spill]] %s1447_s0 }
   0x2   :  { %1460 = sst [smem:[#allocation16_spill]] %s1449_s2 }
   0x3   :  { %9 = vsyncpa [#allocation4], 0 }
   0x4   :  { %11 = vsyncpa [#allocation4 + $0x1], 0 }
   0x5   :  { %12 = vsyncpa [#allocation7], 0 }
   0x6   :  { %14 = vsyncpa [#allocation7 + $0x1], 0 }
   0x7   :  { %15 = vsyncpa [#allocation5], 0 }
   0x8   :  { %17 = vsyncpa [#allocation5 + $0x1], 0  ;;  %s1174_s15 = smov 0   ;;  %s1176_s16 = smov 0  }
   0x9   :  { %s1178_s17 = smov 0   ;;  %s1180_s18 = smov 0  }
   0xa LB: > { %s1195_s19 = sadd.s32 4294967295, %s1135_s18   ;;  %s730_s20 = sadd.s32 4294967294, %s1135_s18   ;;  %s1135_s18 = sphi %s1180_s18, %s1483_s18   ;;  %s1131_s17 = sphi %s1178_s17, %s1482_s17   ;;  %s1127_s16 = sphi %s1176_s16, %s1481_s16   ;;  %s1123_s15 = sphi %s1174_s15, %s1480_s15  }
   0xb   : > { %p43_p0 = scmp.ne.s32.totalorder %s1127_s16, %s1123_s15  ;;  %p1452_p1 = scmp.eq.s32.totalorder %s1195_s19, 0 }
   0xc   : > { %p141_p3 = scmp.eq.s32.totalorder %s730_s20, 1  ;;  %p731_p5 = scmp.ge.s32.totalorder %s1135_s18, 1 }
   0xd   : > { %p1204_p4 = por %p1452_p1, %p43_p0  ;;  %p148_p7 = scmp.lt.s32.totalorder %s1135_s18, 3 }
   0xe   : > { %p1209_p6 = por %p141_p3, %p43_p0  ;;  %s1137_s24 = smov [#allocation8]  }
   0xf   : > { %s1461_s21 = scalar_select %p1204_p4, 1, 0 }
  0x10   : > { %s1462_s22 = scalar_select %p1209_p6, 1, 0 }
  0x11   : > { %p1214_p8 = pnand %p731_p5, %p148_p7  ;;  %s160_s25 = sshll.u32 %s1137_s24, 4  ;;  %s1218_s25 = int_to_ptr.vmem [resolvable:$true] %s160_s25 }
  0x12   : > { %s1230_s27 = sadd.s32 1, %s1135_s18   ;;  %s30_s28 = sadd.s32 1, %s1131_s17 }
  0x13   : > { %s1463_s23 = scalar_select %p1214_p8, 1, 0 }
  0x14   : > { %p913_p9 = pneg %p1214_p8  ;;  %s27_s29 = ssub.s32 %s1135_s18, %s1230_s27 }
  0x15   : > { %s1465_s2 = sld [smem:[#allocation16_spill]] }
  0x16   : > { %p1225_p11 = pnand %p913_p9, %p1452_p1 }
  0x18   : > { %p975_p13 = pneg %p1225_p11 }
  0x1b   : > { %s973_s6 = scalar_lea.hbm %s1465_s2, 3072 }
  0x1c   : > { %p974_p12 = scmp.ne.s32.totalorder %s1465_s2, %s973_s6  ;;  %p980_p5 = scmp.lt.u32.totalorder %s973_s6, %s1465_s2 }
  0x1e   : > { %p976_p0 = pnand %p975_p13, %p974_p12 }
  0x20   : > { %p977_p3 = pneg %p976_p0 }
  0x22   : > { %p982_p7 = pnand %p980_p5, %p977_p3 }
  0x24   : > { %985 = shalt.err (!%p982_p7)
}
  0x25   : > { %s986_s11 = scalar_lea.vmem %s1218_s25, 3072  ;;  %p994_p2 = scmp.lt.s32.totalorder %s1218_s25, %s1218_s25 }
  0x26   : > { %p987_p9 = scmp.ne.s32.totalorder %s1218_s25, %s986_s11  ;;  %p995_p6 = scmp.lt.s32.totalorder %s986_s11, %s986_s11 }
  0x28   : > { %p989_p10 = pnand %p987_p9, %p975_p13  ;;  %p996_p4 = por %p995_p6, %p994_p2 }
  0x2a   : > { %p990_p1 = pneg %p989_p10 }
  0x2c   : > { %p997_p8 = pnand %p996_p4, %p990_p1 }
  0x2e   : > { %1000 = shalt.err (!%p997_p8)
}
  0x2f   : > { %s1455_s12 = smov 128   ;;  %s1457_s13 = smov 8  }
  0x30   : > { %916 = dma.hbm_to_vmem [thread:$0]  (!%p1225_p11), %s1465_s2, 3072, %s1218_s25, [#allocation7], %s1455_s12, %s1455_s12, %s1457_s13  }
  0x31   : > { %p28_p1 = scmp.eq.s32.totalorder %s27_s29, 0  ;;  %p37_p2 = scmp.ne.s32.totalorder %s1131_s17, %s1127_s16 }
  0x32   : > { %p38_p4 = scmp.eq.s32.totalorder %s1135_s18, 0  ;;  %p929_p6 = scmp.lt.s32.totalorder %s1135_s18, 2 }
  0x33   : > { %s1264_s24 = scalar_select %p28_p1, %s1131_s17, %s30_s28  }
  0x34   : > { %p39_p8 = por %p38_p4, %p37_p2  ;;  %p1467_p10 = scmp.eq.s32.totalorder %s1195_s19, 1 }
  0x35   : > { %1466 = sst [smem:[#allocation14_spill]] %s1264_s24  ;;  %s177_s26 = sand.u32 1, %s1131_s17  }
  0x36   : > { %p1268_p12 = por %p1467_p10, %p37_p2  ;;  %s761_s5 = sshll.u32 %s1135_s18, 9 }
  0x37   : > { %s1274_s6 = sshll.u32 %s177_s26, 5  ;;  %s1469_s0 = sld [smem:[#allocation15_spill]] }
  0x38   : > { %s181_s28 = scalar_lea.vmem [#allocation3], %s1274_s6  ;;  %p1282_p11 = pnand %p929_p6, %p39_p8 }
  0x39   : > { %s188_s29 = sshll.u32 %s181_s28, 4  ;;  %s1291_s14 = scalar_lea.hbm %s1448_s1, %s761_s5  ;;  %s1286_s29 = int_to_ptr.vmem [resolvable:$true] %s188_s29 }
  0x3a   : > { %s1293_s20 = scalar_lea.sflag [#allocation4], %s177_s26  ;;  %p1003_p0 = pneg %p1282_p11 }
  0x3d   : > { %s1279_s25 = scalar_lea.hbm %s1469_s0, %s761_s5  ;;  %s1006_s12 = scalar_lea.hbm %s1469_s0, 1024 }
  0x3e   : > { %s1001_s7 = scalar_lea.hbm %s1279_s25, 512  ;;  %p1007_p7 = scmp.lt.u32.totalorder %s1279_s25, %s1469_s0 }
  0x3f   : > { %p1002_p13 = scmp.ne.s32.totalorder %s1279_s25, %s1001_s7  ;;  %p1008_p9 = scmp.lt.u32.totalorder %s1006_s12, %s1001_s7 }
  0x40   : > { %p1010_p2 = scmp.lt.u32.totalorder %s1001_s7, %s1279_s25 }
  0x41   : > { %p1004_p3 = pnand %p1003_p0, %p1002_p13  ;;  %p1009_p1 = por %p1008_p9, %p1007_p7 }
  0x43   : > { %p1005_p5 = pneg %p1004_p3  ;;  %p1011_p4 = por %p1010_p2, %p1009_p1 }
  0x45   : > { %p1012_p6 = pnand %p1011_p4, %p1005_p5 }
  0x47   : > { %1015 = shalt.err (!%p1012_p6)
}
  0x48   : > { %s1016_s26 = scalar_lea.vmem %s1286_s29, 512  ;;  %s1140_s5 = smov [#allocation3]  }
  0x49   : > { %p1017_p8 = scmp.ne.s32.totalorder %s1286_s29, %s1016_s26  ;;  %s1021_s10 = sshll.u32 %s1140_s5, 4  ;;  %s1022_s10 = int_to_ptr.vmem [resolvable:$false] %s1021_s10 }
  0x4a   : > { %s1023_s2 = scalar_lea.vmem %s1022_s10, 1024  ;;  %p1024_p3 = scmp.lt.s32.totalorder %s1286_s29, %s1022_s10 }
  0x4b   : > { %p1019_p10 = pnand %p1017_p8, %p1003_p0  ;;  %p1025_p7 = scmp.lt.s32.totalorder %s1023_s2, %s1016_s26 }
  0x4d   : > { %p1020_p13 = pneg %p1019_p10  ;;  %p1026_p9 = por %p1025_p7, %p1024_p3 }
  0x4f   : > { %p1027_p1 = pnand %p1026_p9, %p1020_p13 }
  0x51   : > { %1030 = shalt.err (!%p1027_p1)
}
  0x52   : > { %s1471_s12 = smov 8   ;;  %s1472_s13 = smov 128  }
  0x53   : > { %920 = dma.hbm_to_vmem [thread:$0]  (!%p1282_p11), %s1279_s25, 512, %s1286_s29, %s1293_s20, %s1472_s13, %s1472_s13, %s1471_s12  }
  0x54   : > { %s202_s11 = scalar_lea.vmem [#allocation6], %s1274_s6  ;;  %s198_s8 = sand.u32 1, %s1135_s18  }
  0x55   : > { %s209_s7 = sshll.u32 %s202_s11, 4  ;;  %s1328_s28 = scalar_lea.sflag [#allocation7], %s198_s8  ;;  %s1326_s7 = int_to_ptr.vmem [resolvable:$true] %s209_s7 }
  0x56   : > { %s1031_s26 = scalar_lea.hbm %s1291_s14, 512  ;;  %s1036_s2 = scalar_lea.hbm %s1448_s1, 1024 }
  0x57   : > { %p1032_p5 = scmp.ne.s32.totalorder %s1291_s14, %s1031_s26  ;;  %p1037_p6 = scmp.lt.u32.totalorder %s1291_s14, %s1448_s1 }
  0x58   : > { %p1038_p8 = scmp.lt.u32.totalorder %s1036_s2, %s1031_s26  ;;  %p1040_p13 = scmp.lt.u32.totalorder %s1031_s26, %s1291_s14 }
  0x59   : > { %p1034_p2 = pnand %p1032_p5, %p1003_p0 }
  0x5a   : > { %p1039_p10 = por %p1038_p8, %p1037_p6 }
  0x5b   : > { %p1035_p4 = pneg %p1034_p2 }
  0x5c   : > { %p1041_p3 = por %p1040_p13, %p1039_p10 }
  0x5e   : > { %p1042_p7 = pnand %p1041_p3, %p1035_p4 }
  0x60   : > { %1045 = shalt.err (!%p1042_p7)
}
  0x61   : > { %s1046_s6 = scalar_lea.vmem %s1326_s7, 512  ;;  %s1141_s25 = smov [#allocation6]  }
  0x62   : > { %p1047_p9 = scmp.ne.s32.totalorder %s1326_s7, %s1046_s6  ;;  %s1051_s29 = sshll.u32 %s1141_s25, 4  ;;  %s1052_s29 = int_to_ptr.vmem [resolvable:$false] %s1051_s29 }
  0x63   : > { %s1053_s0 = scalar_lea.vmem %s1052_s29, 1024  ;;  %p1054_p2 = scmp.lt.s32.totalorder %s1326_s7, %s1052_s29 }
  0x64   : > { %p1049_p1 = pnand %p1047_p9, %p1003_p0  ;;  %p1055_p6 = scmp.lt.s32.totalorder %s1053_s0, %s1046_s6 }
  0x66   : > { %p1050_p5 = pneg %p1049_p1  ;;  %p1056_p8 = por %p1055_p6, %p1054_p2 }
  0x68   : > { %p1057_p10 = pnand %p1056_p8, %p1050_p5 }
  0x6a   : > { %1060 = shalt.err (!%p1057_p10)
}
  0x6b   : > { %923 = dma.hbm_to_vmem [thread:$0]  (!%p1282_p11), %s1291_s14, 512, %s1326_s7, %s1328_s28, %s1472_s13, %s1472_s13, %s1471_s12  }
  0x6c   : > { %p1473_p0 = scmp.ne.s32.totalorder %s1463_s23, 0 }
  0x6d   : > { %s1360_s24 = sand.u32 (!%p1473_p0), 1, %s1127_s16   ;;  %p1474_p4 = scmp.ne.s32.totalorder (!%p1473_p0), %s1461_s21, 0 }
  0x6e   : > { %221 = sbr.rel (%p1473_p0) target bundleno = 509 (0x1fd), region = 36  ;;  %s741_s20 = sshll.u32 (!%p1473_p0), %s1360_s24, 5 }
  0x6f   : > { %s224_s11 = scalar_lea.sflag (!%p1473_p0), [#allocation4], %s1360_s24  ;;  %s1364_s8 = scalar_lea.vmem (!%p1473_p0), [#allocation3], %s741_s20 }
  0x75   : > { %1106 = dma.done.wait (%p1474_p4), %s224_s11, 512  }
  0x76   : > { %1108 = vsyncadd (%p1474_p4), %s224_s11, 4294966784  ;;  %s232_s9 = sand.u32 1, %s1195_s19   ;;  %s236_s14 = scalar_lea.vmem [#allocation6], %s741_s20 }
  0x77   : > { %s233_s23 = scalar_lea.sflag [#allocation7], %s232_s9 }
  0x78   : > { %1110 = dma.done.wait (%p1474_p4), %s233_s23, 512  }
  0x79   : > { %1112 = vsyncadd (%p1474_p4), %s233_s23, 4294966784  ;;  %p1475_p11 = scmp.eq.s32.totalorder %s1195_s19, 0 }
  0x7b   : > { %1114 = dma.done.wait (%p1475_p11), [#allocation7], 3072   ;;  %p1476_p13 = pmov %p1475_p11 }
  0x7c   : > { %vm270_vm0 = vcmask 523264   ;;  %v1142_v0 = vmov 0.0   ;;  %vm273_vm1 = vcmask 517120   ;;  %v294_v1 = vld [vmem:[%s1364_s8] sm:$0xff]  ;;  %v745_v2 = vld [vmem:[%s236_s14 + $0x10] sm:$0xff]  ;;  %vm277_vm2 = vcmask 130048  }
  0x7d   : > { %1116 = vsyncadd (%p1476_p13), [#allocation7], 4294964224  ;;  %271 = vst.msk [vmem:[#allocation2] sm:$0xff] %vm270_vm0, %v1142_v0  ;;  %s1143_s21 = smov 32   ;;  %s1144_s12 = smov 16   ;;  %v295_v3 = vld [vmem:[%s1364_s8 + $0x8] sm:$0xff] }
  0x7e   : > { %272 = vst.msk [vmem:[#allocation2 + $0x8] sm:$0xff] %vm270_vm0, %v1142_v0  ;;  %298 = vrot.lane.b32.xlu1 %v294_v1, %s1143_s21  ;;  %285 = vrot.lane.b32.xlu0 %v745_v2, %s1144_s12  ;;  %v323_v4 = vld [vmem:[#allocation8] sm:$0xff]  ;;  %v746_v5 = vld [vmem:[%s236_s14 + $0x18] sm:$0xff]  ;;  %v324_v7 = vld [vmem:[#allocation8 + $0x8] sm:$0xff]  ;;  %s1145_s13 = smov 48   ;;  %vm291_vm3 = vcmask 261248  }
  0x7f   : > { %274 = vst.msk [vmem:[#allocation2 + $0x10] sm:$0x3] %vm273_vm1, %v1142_v0  ;;  %v275_v6 = vld [vmem:[%s236_s14] sm:$0xff]  ;;  %v867_v8 = vpack.c.bf16 %v324_v7, %v323_v4  ;;  %v335_v10 = vld [vmem:[#allocation8 + $0x48] sm:$0xff]  ;;  %v748_v12 = vld [vmem:[%s1364_s8 + $0x18] sm:$0xff]  ;;  %vm304_vm4 = vcmask 392448  }
  0x80   : > { %278 = vst.msk [vmem:[#allocation2 + $0x1] sm:$0xff] %vm277_vm2, %v275_v6  ;;  %v334_v9 = vld [vmem:[#allocation8 + $0x40] sm:$0xff]  ;;  %v276_v11 = vld [vmem:[%s236_s14 + $0x8] sm:$0xff]  ;;  %v325_v14 = vld [vmem:[#allocation8 + $0x10] sm:$0xff]  ;;  %vm318_vm5 = vcmask 523648   ;;  %s744_s7 = sshll.u32 %s1360_s24, 4 }
  0x81   : > { %v851_v13 = vpack.c.bf16 %v335_v10, %v334_v9  ;;  %279 = vst.msk [vmem:[#allocation2 + $0x9] sm:$0xff] %vm277_vm2, %v276_v11  ;;  %v326_v15 = vld [vmem:[#allocation8 + $0x18] sm:$0xff]  ;;  %v336_v16 = vld [vmem:[#allocation8 + $0x50] sm:$0xff]  ;;  %v327_v19 = vld [vmem:[#allocation8 + $0x20] sm:$0xff]  ;;  %868 = vmatprep.subr.bf16.mxu0 %v867_v8  ;;  %s269_s5 = scalar_lea.vmem [#allocation9], %s744_s7  ;;  %s763_s2 = sshll.u32 %s1195_s19, 8 }
  0x82   : > { %300 = vrot.lane.b32.xlu1 %v295_v3, %s1143_s21  ;;  %287 = vrot.lane.b32.xlu0 %v746_v5, %s1144_s12  ;;  %v871_v17 = vpack.c.bf16 %v326_v15, %v325_v14  ;;  %v337_v18 = vld [vmem:[#allocation8 + $0x58] sm:$0xff]  ;;  %v328_v20 = vld [vmem:[#allocation8 + $0x28] sm:$0xff]  ;;  %v747_v21 = vld [vmem:[%s1364_s8 + $0x10] sm:$0xff]  ;;  %s625_s10 = sshll.u32 %s269_s5, 4  ;;  %s1403_s29 = scalar_lea.hbm %s1451_s4, %s763_s2  ;;  %s1398_s10 = int_to_ptr.vmem [resolvable:$true] %s625_s10 }
  0x83   : > { %852 = vmatprep.subr.bf16.mxu1 %v851_v13  ;;  %v855_v22 = vpack.c.bf16 %v337_v18, %v336_v16  ;;  %v338_v23 = vld [vmem:[#allocation8 + $0x60] sm:$0xff]  ;;  %v339_v24 = vld [vmem:[#allocation8 + $0x68] sm:$0xff]  ;;  %870 = vmatpush3.bf16.msra.mxu0 %v867_v8  ;;  %v875_v25 = vpack.c.bf16 %v328_v20, %v327_v19  ;;  %v329_v27 = vld [vmem:[#allocation8 + $0x30] sm:$0xff]  ;;  %s612_s0 = scalar_lea.sflag [#allocation5], %s1360_s24  ;;  %s1061_s20 = scalar_lea.vmem %s1398_s10, 256 }
  0x84   : > { %854 = vmatpush3.bf16.msra.mxu1 %v851_v13  ;;  %872 = vmatprep.subr.bf16.mxu0 %v871_v17  ;;  %v859_v26 = vpack.c.bf16 %v339_v24, %v338_v23  ;;  %v330_v28 = vld [vmem:[#allocation8 + $0x38] sm:$0xff]  ;;  %v340_v29 = vld [vmem:[#allocation8 + $0x70] sm:$0xff]  ;;  %v507_v33 = vld [vmem:[#allocation8 + $0x80] sm:$0xff]  ;;  %p1062_p3 = scmp.ne.s32.totalorder %s1398_s10, %s1061_s20  ;;  %s1146_s19 = smov [#allocation9]  }
  0x85   : > { %856 = vmatprep.subr.bf16.mxu1 %v855_v22  ;;  %v341_v30 = vld [vmem:[#allocation8 + $0x78] sm:$0xff]  ;;  %v879_v31 = vpack.c.bf16 %v330_v28, %v329_v27  ;;  %v508_v34 = vld [vmem:[#allocation8 + $0x88] sm:$0xff]  ;;  %v509_v42 = vld [vmem:[#allocation8 + $0x90] sm:$0xff]  ;;  %s1065_s11 = sshll.u32 %s1146_s19, 4  ;;  %s1066_s11 = int_to_ptr.vmem [resolvable:$false] %s1065_s11 }
  0x86   : > { %314 = vrot.lane.b32.xlu1 %v748_v12, %s1145_s13  ;;  %312 = vrot.lane.b32.xlu0 %v747_v21, %s1145_s13  ;;  %v863_v32 = vpack.c.bf16 %v341_v30, %v340_v29  ;;  %v883_v35 = vpack.c.bf16 %v508_v34, %v507_v33  ;;  %v510_v43 = vld [vmem:[#allocation8 + $0x98] sm:$0xff]  ;;  %v511_v49 = vld [vmem:[#allocation8 + $0xa0] sm:$0xff]  ;;  %v512_v50 = vld [vmem:[#allocation8 + $0xa8] sm:$0xff]  ;;  %p1063_p7 = pnand %p1062_p3, %p1268_p12  ;;  %s1067_s8 = scalar_lea.vmem %s1066_s11, 512 }
  0x87   : > { %874 = vmatpush3.bf16.msra.mxu0 %v871_v17  ;;  %v887_v47 = vpack.c.bf16 %v510_v43, %v509_v42  ;;  %v891_v52 = vpack.c.bf16 %v512_v50, %v511_v49  ;;  %v513_v53 = vld [vmem:[#allocation8 + $0xb0] sm:$0xff]  ;;  %v514_v54 = vld [vmem:[#allocation8 + $0xb8] sm:$0xff]  ;;  %v755_v60 = vld [vmem:[%s1450_s3] ss:$0 sm:$0xff]  ;;  %p1068_p1 = scmp.lt.s32.totalorder %s1398_s10, %s1066_s11  ;;  %p1069_p5 = scmp.lt.s32.totalorder %s1067_s8, %s1061_s20 }
  0x88   : > { %858 = vmatpush3.bf16.msra.mxu1 %v855_v22  ;;  %876 = vmatprep.subr.bf16.mxu0 %v875_v25  ;;  %v895_v55 = vpack.c.bf16 %v514_v54, %v513_v53  ;;  %p1064_p9 = pneg %p1063_p7 }
  0x89   : > { %860 = vmatprep.subr.bf16.mxu1 %v859_v26  ;;  %p1070_p2 = por %p1069_p5, %p1068_p1 }
  0x8b   : > { %878 = vmatpush3.bf16.msra.mxu0 %v875_v25  ;;  %p1071_p6 = pnand %p1070_p2, %p1064_p9 }
  0x8c   : > { %862 = vmatpush3.bf16.msra.mxu1 %v859_v26  ;;  %880 = vmatprep.subr.bf16.mxu0 %v879_v31 }
  0x8d   : > { %864 = vmatprep.subr.bf16.mxu1 %v863_v32 }
  0x8f   : > { %882 = vmatpush3.bf16.msra.mxu0 %v879_v31 }
  0x90   : > { %866 = vmatpush3.bf16.msra.mxu1 %v863_v32  ;;  %884 = vmatprep.subr.bf16.mxu0 %v883_v35 }
  0xf0   : > { %v299_v36 = vpop.permute.xlu1 %298  ;;  %v286_v37 = vpop.permute.xlu0 %285 }
  0xf1   : > { %292 = vst.msk [vmem:[#allocation2 + $0x1] sm:$0xff] %vm291_vm3, %v286_v37 }
  0xf2   : > { %305 = vst.msk [vmem:[#allocation2 + $0x1] sm:$0xff] %vm304_vm4, %v299_v36 }
  0xf4   : > { %v301_v38 = vpop.permute.xlu1 %300  ;;  %v288_v39 = vpop.permute.xlu0 %287 }
  0xf5   : > { %293 = vst.msk [vmem:[#allocation2 + $0x9] sm:$0xff] %vm291_vm3, %v288_v39 }
  0xf6   : > { %306 = vst.msk [vmem:[#allocation2 + $0x9] sm:$0xff] %vm304_vm4, %v301_v38 }
  0xf8   : > { %v315_v40 = vpop.permute.xlu1 %314  ;;  %v313_v41 = vpop.permute.xlu0 %312 }
  0xf9   : > { %320 = vst.msk [vmem:[#allocation2 + $0x9] sm:$0xff] %vm318_vm5, %v315_v40  ;;  %319 = vst.msk [vmem:[#allocation2 + $0x1] sm:$0xff] %vm318_vm5, %v313_v41 }
 0x100   : > { %v331_v44 = vld [vmem:[#allocation2 + $0x1] sm:$0xff]  ;;  %v332_v46 = vld [vmem:[#allocation2 + $0x9] sm:$0xff] }
 0x101   : > { %v321_v45 = vld [vmem:[#allocation2] sm:$0xff]  ;;  %810 = vmatprep.mubr.msk.f32.mxu1 %vm270_vm0, %v331_v44  ;;  %v322_v48 = vld [vmem:[#allocation2 + $0x8] sm:$0xff] }
 0x102   : > { %829 = vmatprep.mubr.msk.f32.mxu0 %vm270_vm0, %v321_v45  ;;  %811 = vmatmul.mubr.msk.f32.vlgmr.msra.gmra.mrb[0].mxu1 %vm270_vm0, %v332_v46  ;;  %v504_v51 = vld [vmem:[#allocation2 + $0x2] sm:$0xff]  ;;  %v505_v56 = vld [vmem:[#allocation2 + $0xa] sm:$0xff] }
 0x103   : > { %830 = vmatmul.mubr.msk.f32.vlgmr.msra.gmra.mrb[0].mxu0 %vm270_vm0, %v322_v48 }
 0x104   : > { %886 = vmatpush3.bf16.msra.mxu0 %v883_v35  ;;  %848 = vmatprep.mubr.msk.f32.mxu0 %vm270_vm0, %v504_v51 }
 0x105   : > { %888 = vmatprep.subr.bf16.mxu0 %v887_v47 }
 0x108   : > { %890 = vmatpush3.bf16.msra.mxu0 %v887_v47 }
 0x109   : > { %892 = vmatprep.subr.bf16.mxu0 %v891_v52 }
 0x10c   : > { %894 = vmatpush3.bf16.msra.mxu0 %v891_v52 }
 0x10d   : > { %896 = vmatprep.subr.bf16.mxu0 %v895_v55 }
 0x110   : > { %898 = vmatpush3.bf16.msra.mxu0 %v895_v55 }
 0x113   : > { %849 = vmatmul.mubr.msk.f32.vlgmr.msra.gmra.mrb[0].mxu0 %vm270_vm0, %v505_v56 }
 0x1d5   : > { %v812_v57 = vpop.f32.mrb[0].mxu1 }
 0x1d6   : > { %v414_v58 = vpop.f32.mrb[1].mxu1 }
 0x1e6   : > { %v850_v59 = vpop.f32.mrb[0].mxu0 }
 0x1e7   : > { %v899_v61 = vadd.f32 %v850_v59, %v812_v57  ;;  %v587_v62 = vpop.f32.mrb[1].mxu0 }
 0x1e8   : > { %v900_v63 = vadd.f32 %v587_v62, %v414_v58 }
 0x1e9   : > { %v606_v0 = vadd.f32 %v899_v61, %v755_v60 }
 0x1ea   : > { %v605_v1 = vadd.f32 %v900_v63, %v755_v60 }
 0x1eb   : > { %v608_v2 = vmax.f32 %v606_v0, 0.0 }
 0x1ec   : > { %v607_v3 = vmax.f32 %v605_v1, 0.0 }
 0x1ed   : > { %610 = vst [vmem:[%s269_s5 + $0x8] sm:$0xff] %v608_v2 }
 0x1ee   : > { %609 = vst [vmem:[%s269_s5] sm:$0xff] %v607_v3 }
 0x1ef   : > { %1074 = shalt.err (!%p1071_p6)
}
 0x1f0   : > { %s1075_s9 = scalar_lea.hbm %s1403_s29, 256  ;;  %s1079_s21 = scalar_lea.hbm %s1451_s4, 512 }
 0x1f1   : > { %p1076_p8 = scmp.ne.s32.totalorder %s1403_s29, %s1075_s9  ;;  %p1080_p4 = scmp.lt.u32.totalorder %s1403_s29, %s1451_s4 }
 0x1f2   : > { %p1081_p11 = scmp.lt.u32.totalorder %s1079_s21, %s1075_s9  ;;  %p1083_p3 = scmp.lt.u32.totalorder %s1075_s9, %s1403_s29 }
 0x1f3   : > { %p1077_p10 = pnand %p1076_p8, %p1268_p12 }
 0x1f4   : > { %p1082_p13 = por %p1081_p11, %p1080_p4 }
 0x1f5   : > { %p1078_p0 = pneg %p1077_p10 }
 0x1f6   : > { %p1084_p7 = por %p1083_p3, %p1082_p13 }
 0x1f8   : > { %p1085_p9 = pnand %p1084_p7, %p1078_p0 }
 0x1fa   : > { %1088 = shalt.err (!%p1085_p9)
}
 0x1fb   : > { %s1147_s7 = smov 128   ;;  %s1148_s28 = smov 8  }
 0x1fc   : > { %911 = dma.vmem_to_hbm [thread:$0]  (%p1268_p12), %s1398_s10, 256, %s1403_s29, %s612_s0, %s1147_s7, %s1147_s7, %s1148_s28  }
 0x1fd PF: > { %s640_s26 = sand.u32 1, %s1123_s15   ;;  %p1477_p1 = scmp.ne.s32.totalorder %s1462_s22, 0 }
 0x1fe   : > { %p1478_p5 = scmp.ge.s32.totalorder %s1135_s18, 2  ;;  %s641_s5 = scalar_lea.sflag [#allocation5], %s640_s26 }
 0x200   : > { %p925_p2 = pnand %p1478_p5, %p1477_p1 }
 0x202   : > { %1118 = dma.done.wait (!%p925_p2), %s641_s5, 256  }
 0x203   : > { %1120 = vsyncadd (!%p925_p2), %s641_s5, 4294967040  ;;  %s1479_s2 = sld [smem:[#allocation14_spill]]  ;;  %p20_p6 = scmp.ge.s32.totalorder %s1230_s27, 4  }
 0x204   : > { %s1480_s15 = smov %s1127_s16  ;;  %s1481_s16 = smov %s1131_s17 }
 0x205   : > { %s1483_s18 = smov %s1230_s27  ;;  %22 = sbr.rel (!%p20_p6) target bundleno = 10 (0xa), region = 102 }
 0x209   : > { %s1482_s17 = smov %s1479_s2 }
 0x20c   :  { %646 = vsyncpa [#allocation4], 1 }
 0x20d   :  { %648 = vsyncpa [#allocation4 + $0x1], 1 }
 0x20e   :  { %649 = vsyncpa [#allocation7], 1 }
 0x20f   :  { %651 = vsyncpa [#allocation7 + $0x1], 1 }
 0x210   :  { %652 = vsyncpa [#allocation5], 1 }
 0x211   :  { %654 = vsyncpa [#allocation5 + $0x1], 1 }

</bundles_post_ra>
